<compile_context>
chip_gen: v6e
topology: v6e:2x2x1
jax: 0.10.0
libtpu: 0.0.40
codegen_flags: <defaults>
</compile_context>

<pallas_src>
import functools

import jax
import jax.numpy as jnp
from jax.experimental import pallas as pl
from jax.experimental.pallas import tpu as pltpu

NEG_BIG = -1e30   # large negative *finite* pad for bias lanes (avoid -inf -> NaN)
_LANE = 128
_SUBLANE = 8


def _round_up(x, m):
    return (x + m - 1) // m * m


@functools.lru_cache(maxsize=None)
def _vmem_budget_bytes():
    """Scoped-VMEM limit to request (generation aware, conservative on failure)."""
    try:
        phys = int(pltpu.get_tpu_info().vmem_capacity_bytes)
    except Exception:
        phys = 64 * 1024 * 1024          # assume the smallest (v7x) if query fails
    # Half of physical VMEM: 32 MiB on v7x (64 MiB phys), 64 MiB on v5e/v6e.
    return max(min(phys // 2, 64 * 1024 * 1024), 16 * 1024 * 1024)


def _largest_divisor_tile(total, cap):
    """Largest multiple of 128 that divides `total` (a multiple of 128) and is
    <= cap, so K-tiling never forces wrapper-side re-padding of the weight."""
    n = total // _LANE
    cap_units = max(cap // _LANE, 1)
    best = 1
    for d in range(1, n + 1):
        if n % d == 0 and d <= cap_units:
            best = d
    return best * _LANE


def _pick_batch_tile(B, max_rows, x_dtype):
    """tb == B (full dim, no pad, any size allowed) when it fits; otherwise a
    packing-aligned tile with the batch padded up to a multiple of it."""
    if B <= max_rows:
        return B, B
    # sublane packing: 32 rows/vreg for int8, 16 for bf16, 8 for f32
    align = {1: 32, 2: 16}.get(jnp.dtype(x_dtype).itemsize, _SUBLANE)
    tb = max((int(max_rows) // align) * align, align)
    return tb, _round_up(B, tb)


def _plan(B, v_pad, l_pad, x_dtype, w_dtype, tb_cap, tv_cap, budget,
          weight_resident):
    """Pick (regime, tb, b_pad, tv) so the double-buffered footprint fits."""
    xs = jnp.dtype(x_dtype).itemsize
    ws = jnp.dtype(w_dtype).itemsize
    out_row = 2 * l_pad * 4                       # double-buffered f32 out rows

    # ---- Regime A: weight fully VMEM-resident (fetched once, 1-D grid) ----
    if weight_resident is not False:
        rem = budget - 2 * v_pad * l_pad * ws     # 2x: conservative vs buffering
        per_row = 2 * v_pad * xs + out_row
        max_rows = min(rem // per_row, tb_cap) if rem > 0 else 0
        if max_rows >= min(B, _SUBLANE):
            tb, b_pad = _pick_batch_tile(B, max_rows, x_dtype)
            return dict(resident=True, tb=tb, b_pad=b_pad, tv=v_pad)

    # ---- Regime B: stream (tv, l_pad) weight tiles, accumulate in o_ref ----
    tv = _largest_divisor_tile(v_pad, max(tv_cap, _LANE))
    while True:
        per_row = 2 * tv * xs + out_row
        rem = budget - 2 * tv * l_pad * ws
        max_rows = min(rem // per_row, tb_cap) if rem > 0 else 0
        if max_rows >= min(B, _SUBLANE) or tv == _LANE:
            break
        tv = _largest_divisor_tile(v_pad, tv - _LANE)
    tb, b_pad = _pick_batch_tile(B, max(max_rows, min(B, _SUBLANE)), x_dtype)
    return dict(resident=False, tb=tb, b_pad=b_pad, tv=tv)


# ----------------------------- kernels ------------------------------------ #

def _bow_kernel_resident(x_ref, w_ref, b_ref, o_ref):
    # x: [tb, V_pad] (input dtype), w: [V_pad, L_pad] (compute dtype, VMEM
    # resident — fetched once), b: [1, L_pad] f32, o: [tb, L_pad] f32.
    x = x_ref[...]
    if x.dtype != w_ref.dtype:
        x = x.astype(w_ref.dtype)                 # cast in VMEM, not in HBM
    logits = jnp.dot(x, w_ref[...], preferred_element_type=jnp.float32)
    logits = logits + b_ref[...]
    m = jnp.max(logits, axis=-1, keepdims=True)
    shifted = logits - m
    lse = jnp.log(jnp.sum(jnp.exp(shifted), axis=-1, keepdims=True))
    o_ref[...] = shifted - lse


def _bow_kernel_streamed(x_ref, w_ref, b_ref, o_ref):
    # x: [tb, tv] (input dtype), w: [tv, L_pad] (compute dtype),
    # b: [1, L_pad] f32, o: [tb, L_pad] f32 — o is the accumulator (resident
    # across the k axis; no scratch needed).
    k = pl.program_id(1)

    @pl.when(k == 0)
    def _():
        # Fold the bias into the accumulator init (drops the epilogue add).
        o_ref[...] = jnp.broadcast_to(b_ref[...], o_ref.shape)

    x = x_ref[...]
    if x.dtype != w_ref.dtype:
        x = x.astype(w_ref.dtype)                 # cast in VMEM, not in HBM
    o_ref[...] += jnp.dot(x, w_ref[...], preferred_element_type=jnp.float32)

    @pl.when(k == pl.num_programs(1) - 1)
    def _():
        logits = o_ref[...]
        m = jnp.max(logits, axis=-1, keepdims=True)
        shifted = logits - m
        lse = jnp.log(jnp.sum(jnp.exp(shifted), axis=-1, keepdims=True))
        o_ref[...] = shifted - lse


# ----------------------------- wrapper ------------------------------------ #

def prepare_params(weight, bias, compute_dtype=jnp.float32):
    """One-time layout prep (parameter-init time, NOT per forward call):
       * label axis padded to 128 lanes (zero weight cols, NEG_BIG bias) so
         stores/reduces are lane-dense and padded labels vanish from softmax,
       * vocab axis padded to a multiple of 128 so the forward pass never
         re-pads the weight,
       * weight pre-transposed to [V_pad, L_pad] and cast to the compute dtype
         (bf16 halves its HBM/VMEM footprint).  Bias stays f32."""
    L, V = weight.shape
    l_pad = max(_round_up(L, _LANE), _LANE)
    v_pad = _round_up(V, _LANE)
    w = jnp.pad(weight, ((0, l_pad - L), (0, v_pad - V)))        # [L_pad, V_pad]
    w_vl = jnp.transpose(w).astype(compute_dtype)                # [V_pad, L_pad]
    b_row = jnp.pad(
        bias.astype(jnp.float32), (0, l_pad - L), constant_values=NEG_BIG
    ).reshape(1, l_pad)
    return w_vl, b_row


@functools.partial(
    jax.jit,
    static_argnames=("num_labels", "tb_cap", "tv_cap", "weight_resident"),
)
def bow_classifier(bow_vec, w_vl, b_row, *, num_labels,
                   tb_cap=1024, tv_cap=None, weight_resident=None):
    """log_softmax(bow_vec @ W.T + b, axis=-1), matching the PyTorch module.

    bow_vec: [B, V] in any dtype (f32 / bf16 / int8 counts) — cast to the
             weight's compute dtype inside the kernel (no wrapper astype pass).
    w_vl:    [V_pad, L_pad] from prepare_params (compute dtype).
    b_row:   [1, L_pad] f32 from prepare_params.
    """
    B, V = bow_vec.shape
    v_pad, l_pad = w_vl.shape
    assert l_pad % _LANE == 0 and v_pad % _LANE == 0 and v_pad >= V

    budget = _vmem_budget_bytes()
    if tv_cap is None:
        # 16-bit (or narrower) weights are half the bytes -> allow wider K tiles.
        tv_cap = 4096 if jnp.dtype(w_vl.dtype).itemsize <= 2 else 2048

    plan = _plan(B, v_pad, l_pad, bow_vec.dtype, w_vl.dtype,
                 tb_cap, tv_cap, int(budget * 0.75), weight_resident)
    tb, b_pad, tv = plan["tb"], plan["b_pad"], plan["tv"]

    # Only pad x when unavoidable (costs one extra HBM pass over x).  Keeping
    # V a multiple of 128 and B within one tile stays zero-copy.
    x = bow_vec
    if b_pad != B or v_pad != V:
        x = jnp.pad(x, ((0, b_pad - B), (0, v_pad - V)))

    if plan["resident"]:
        # Weight fetched ONCE (constant index_map), one dot per batch tile.
        out = pl.pallas_call(
            _bow_kernel_resident,
            out_shape=jax.ShapeDtypeStruct((b_pad, l_pad), jnp.float32),
            grid_spec=pltpu.PrefetchScalarGridSpec(
                num_scalar_prefetch=0,
                grid=(b_pad // tb,),
                in_specs=[
                    pl.BlockSpec((tb, v_pad), lambda i: (i, 0)),     # x tile
                    pl.BlockSpec((v_pad, l_pad), lambda i: (0, 0)),  # w resident
                    pl.BlockSpec((1, l_pad), lambda i: (0, 0)),      # bias resident
                ],
                out_specs=pl.BlockSpec((tb, l_pad), lambda i: (i, 0)),
            ),
            compiler_params=pltpu.CompilerParams(
                dimension_semantics=("parallel",),
                vmem_limit_bytes=budget,
            ),
        )(x, w_vl, b_row)
    else:
        # Streamed K reduction; output block is the f32 accumulator.
        out = pl.pallas_call(
            _bow_kernel_streamed,
            out_shape=jax.ShapeDtypeStruct((b_pad, l_pad), jnp.float32),
            grid_spec=pltpu.PrefetchScalarGridSpec(
                num_scalar_prefetch=0,
                grid=(b_pad // tb, v_pad // tv),
                in_specs=[
                    pl.BlockSpec((tb, tv), lambda i, k: (i, k)),       # x tile
                    pl.BlockSpec((tv, l_pad), lambda i, k: (k, 0)),    # w tile
                    pl.BlockSpec((1, l_pad), lambda i, k: (0, 0)),     # bias
                ],
                out_specs=pl.BlockSpec((tb, l_pad), lambda i, k: (i, 0)),
            ),
            compiler_params=pltpu.CompilerParams(
                dimension_semantics=("parallel", "arbitrary"),
                vmem_limit_bytes=budget,
            ),
        )(x, w_vl, b_row)

    return out[:B, :num_labels]


if __name__ == "__main__":
    key = jax.random.PRNGKey(0)
    kx, kw, kb, kx2, kw2, kb2 = jax.random.split(key, 6)

    # Small shapes consistent with the module: vocab=128, labels=8, batch=4.
    B, V, L = 4, 128, 8
    bound = 1.0 / jnp.sqrt(jnp.float32(V))
    weight = jax.random.uniform(kw, (L, V), jnp.float32, -bound, bound)
    bias = jax.random.uniform(kb, (L,), jnp.float32, -bound, bound)
    bow_vec = jax.random.uniform(kx, (B, V), jnp.float32, 0.0, 3.0)

    # Plain-JAX reference (matches F.log_softmax(self.linear(bow_vec)), dim=1).
    ref = jax.nn.log_softmax(bow_vec @ weight.T + bias, axis=1)

    # 1) f32 weights, f32 x — weight-resident fast path, tight check.
    w_vl, b_row = prepare_params(weight, bias, jnp.float32)
    out = bow_classifier(bow_vec, w_vl, b_row, num_labels=L)
    jax.block_until_ready(out)
    assert out.shape == (B, L)
    assert jnp.allclose(out, ref, atol=1e-5, rtol=1e-5)

    # 2) bf16 weights (half the weight HBM/VMEM bytes); x stays f32 in HBM and
    #    is cast to bf16 inside the kernel (no wrapper-side astype pass).
    w_bf, b_bf = prepare_params(weight, bias, jnp.bfloat16)
    out_bf = bow_classifier(bow_vec, w_bf, b_bf, num_labels=L)
    jax.block_until_ready(out_bf)
    assert jnp.allclose(out_bf, ref, atol=5e-2, rtol=5e-2)

    # 3) int8 bag-of-words counts (4x fewer x HBM bytes), cast in-kernel to the
    #    f32 compute dtype — exact for counts <= 127.
    counts = jax.random.randint(kx2, (B, V), 0, 5).astype(jnp.int8)
    ref_i = jax.nn.log_softmax(counts.astype(jnp.float32) @ weight.T + bias, axis=1)
    out_i = bow_classifier(counts, w_vl, b_row, num_labels=L)
    jax.block_until_ready(out_i)
    assert jnp.allclose(out_i, ref_i, atol=1e-5, rtol=1e-5)

    # 4) Streamed-weight regime (forced) with a K-tiled reduction (V=512,
    #    tv=128 -> 4 accumulate steps): exercises bias-fold init + accumulate-
    #    into-o_ref + log_softmax epilogue path.
    V2 = 512
    weight2 = jax.random.uniform(kw2, (L, V2), jnp.float32, -bound, bound)
    bias2 = jax.random.uniform(kb2, (L,), jnp.float32, -bound, bound)
    bow2 = jax.random.uniform(jax.random.fold_in(kx, 1), (B, V2), jnp.float32, 0.0, 3.0)
    ref2 = jax.nn.log_softmax(bow2 @ weight2.T + bias2, axis=1)
    w2, b2 = prepare_params(weight2, bias2, jnp.float32)
    out2 = bow_classifier(bow2, w2, b2, num_labels=L,
                          weight_resident=False, tv_cap=128)
    jax.block_until_ready(out2)
    assert out2.shape == (B, L)
    assert jnp.allclose(out2, ref2, atol=1e-4, rtol=1e-4)

    print("KERNEL_OK")
</pallas_src>

<mosaic_0001>
module attributes {stable_mosaic.version = 11 : i64} {
  func.func @_bow_kernel_resident(%arg0: i32, %arg1: memref<4x128xf32, #tpu.memory_space<vmem>>, %arg2: memref<128x128xf32, #tpu.memory_space<vmem>>, %arg3: memref<1x128xf32, #tpu.memory_space<vmem>>, %arg4: memref<4x128xf32, #tpu.memory_space<vmem>>) attributes {dimension_semantics = [#tpu.dimension_semantics<parallel>], iteration_bounds = array<i64: 1>, scalar_prefetch = 0 : i64, scratch_operands = 0 : i64, tpu.core_type = #tpu.core_type<tc>, window_params = [{transform_indices = @transform_0, window_bounds = array<i64: 4, 128>}, {pipeline_mode = #tpu.pipeline_mode<synchronous>, transform_indices = @transform_1, window_bounds = array<i64: 128, 128>}, {pipeline_mode = #tpu.pipeline_mode<synchronous>, transform_indices = @transform_2, window_bounds = array<i64: 1, 128>}, {transform_indices = @transform_3, window_bounds = array<i64: 4, 128>}]} {
    %c0 = arith.constant 0 : index
    %c0_0 = arith.constant 0 : index
    %0 = vector.load %arg1[%c0, %c0_0] : memref<4x128xf32, #tpu.memory_space<vmem>>, vector<4x128xf32>
    %c0_1 = arith.constant 0 : index
    %c0_2 = arith.constant 0 : index
    %1 = vector.load %arg2[%c0_1, %c0_2] : memref<128x128xf32, #tpu.memory_space<vmem>>, vector<128x128xf32>
    %cst = arith.constant dense<0.000000e+00> : vector<4x128xf32>
    %2 = tpu.matmul %0, %1, %cst {dimension_numbers = #tpu.dot_dimension_numbers<[1], [0], [0], [1], [0, 0, 1, 1], [], []>} : vector<4x128xf32>, vector<128x128xf32>, vector<4x128xf32> -> vector<4x128xf32>
    %c0_3 = arith.constant 0 : index
    %c0_4 = arith.constant 0 : index
    %3 = vector.load %arg3[%c0_3, %c0_4] : memref<1x128xf32, #tpu.memory_space<vmem>>, vector<1x128xf32>
    %4 = vector.broadcast %3 : vector<1x128xf32> to vector<4x128xf32>
    %5 = arith.addf %2, %4 : vector<4x128xf32>
    %cst_5 = arith.constant dense<0xFF800000> : vector<4xf32>
    %6 = vector.multi_reduction <maximumf>, %5, %cst_5 [1] : vector<4x128xf32> to vector<4xf32>
    %7 = vector.shape_cast %6 : vector<4xf32> to vector<4x1xf32>
    %8 = vector.broadcast %7 : vector<4x1xf32> to vector<4x128xf32>
    %9 = arith.subf %5, %8 : vector<4x128xf32>
    %10 = math.exp %9 : vector<4x128xf32>
    %cst_6 = arith.constant dense<0.000000e+00> : vector<4xf32>
    %11 = vector.multi_reduction <add>, %10, %cst_6 [1] : vector<4x128xf32> to vector<4xf32>
    %12 = vector.shape_cast %11 : vector<4xf32> to vector<4x1xf32>
    %13 = math.log %12 : vector<4x1xf32>
    %14 = vector.broadcast %13 : vector<4x1xf32> to vector<4x128xf32>
    %15 = arith.subf %9, %14 : vector<4x128xf32>
    %c0_7 = arith.constant 0 : index
    %c0_8 = arith.constant 0 : index
    %16 = vector.load %arg4[%c0_7, %c0_8] : memref<4x128xf32, #tpu.memory_space<vmem>>, vector<4x128xf32>
    tpu.vector_store %arg4[%c0_7, %c0_8], %15 {strides = array<i32>} : memref<4x128xf32, #tpu.memory_space<vmem>>, vector<4x128xf32>,
    return
  }
  func.func @transform_0(%arg0: i32) -> (i32, i32) {
    %c0_i32 = arith.constant 0 : i32
    %c0_i32_0 = arith.constant 0 : i32
    return %arg0, %c0_i32 : i32, i32
  }
  func.func @transform_1(%arg0: i32) -> (i32, i32) {
    %c0_i32 = arith.constant 0 : i32
    %c0_i32_0 = arith.constant 0 : i32
    %c0_i32_1 = arith.constant 0 : i32
    return %c0_i32, %c0_i32_0 : i32, i32
  }
  func.func @transform_2(%arg0: i32) -> (i32, i32) {
    %c0_i32 = arith.constant 0 : i32
    %c0_i32_0 = arith.constant 0 : i32
    %c0_i32_1 = arith.constant 0 : i32
    return %c0_i32, %c0_i32_0 : i32, i32
  }
  func.func @transform_3(%arg0: i32) -> (i32, i32) {
    %c0_i32 = arith.constant 0 : i32
    %c0_i32_0 = arith.constant 0 : i32
    return %arg0, %c0_i32 : i32, i32
  }
}

</mosaic_0001>

<bundles_post_ra>
// kernel: bow_classifier.1
= control target key start
LH: loop header
LB: loop body
LE: loop exit
PB: predicated region body
PF: predicated region fallthrough
CT: control target
= control target key end

     0   :  { %8 = vsyncpa [#allocation3], 0  ;;  %s334_s0 = inlined_call_operand.hbm [shape: f32[4,128], index: 0, kind: input, shape index: {}]   ;;  %s335_s1 = inlined_call_operand.hbm [shape: f32[128,128], index: 1, kind: input, shape index: {}]   ;;  %s336_s2 = inlined_call_operand.vmem [shape: f32[1,128], index: 2, kind: input, shape index: {}]   ;;  %s337_s3 = inlined_call_operand.hbm [shape: f32[4,128], index: 3, kind: output, shape index: {}]  }
   0x1   :  { %9 = vsyncpa [#allocation6], 0 }
   0x2   :  { %10 = vsyncpa [#allocation4], 0  ;;  %s295_s12 = smov [#allocation2]   ;;  %s296_s14 = smov [#allocation5]  }
   0x3   :  { %s17_s13 = sshll.u32 %s295_s12, 4  ;;  %s26_s15 = sshll.u32 %s296_s14, 4  ;;  %s18_s13 = int_to_ptr.vmem [resolvable:$true] %s17_s13  ;;  %s27_s15 = int_to_ptr.vmem [resolvable:$true] %s26_s15 }
   0x4   :  { %s237_s16 = scalar_lea.vmem %s18_s13, 64  ;;  %p242_p1 = scmp.lt.s32.totalorder %s18_s13, %s18_s13 }
   0x5   :  { %p238_p0 = scmp.ne.s32.totalorder %s18_s13, %s237_s16  ;;  %p243_p2 = scmp.lt.s32.totalorder %s237_s16, %s237_s16 }
   0x7   :  { %p244_p3 = por %p243_p2, %p242_p1 }
   0x9   :  { %p245_p4 = pnand %p244_p3, %p238_p0 }
   0xb   :  { %248 = shalt.err (!%p245_p4)
}
   0xc   :  { %20 = dma.hbm_to_vmem [thread:$0]  %s334_s0, 64, %s18_s13, [#allocation3]  }
   0xd   :  { %s257_s19 = scalar_lea.vmem %s27_s15, 2048  ;;  %p262_p6 = scmp.lt.s32.totalorder %s27_s15, %s27_s15 }
   0xe   :  { %p258_p5 = scmp.ne.s32.totalorder %s27_s15, %s257_s19  ;;  %p263_p7 = scmp.lt.s32.totalorder %s257_s19, %s257_s19 }
  0x10   :  { %p264_p8 = por %p263_p7, %p262_p6 }
  0x12   :  { %p265_p9 = pnand %p264_p8, %p258_p5 }
  0x14   :  { %268 = shalt.err (!%p265_p9)
}
  0x15   :  { %s297_s20 = smov 128   ;;  %s298_s21 = smov 8  }
  0x16   :  { %32 = dma.hbm_to_vmem [thread:$0]  %s335_s1, 2048, %s27_s15, [#allocation6], %s297_s20, %s297_s20, %s298_s21  }
  0x17   :  { %289 = dma.done.wait [#allocation3], 64  }
  0x18   :  { %290 = vsyncadd [#allocation3], 4294967232 }
  0x19   :  { %291 = dma.done.wait [#allocation6], 2048  }
  0x1a   :  { %292 = vsyncadd [#allocation6], 4294965248  ;;  %v299_v0 = vmov 0.0   ;;  %vm300_vm0 = vmmov 0   ;;  %v57_v1 = vld [vmem:[#allocation5 + $0x78] sm:$0xff]  ;;  %v56_v2 = vld [vmem:[#allocation5 + $0x70] sm:$0xff] }
  0x1b   :  { %183 = vmatprep.subr.mxu0 %v299_v0  ;;  %215 = vmatprep.mubr.msk.f32.mxu0 %vm300_vm0, %v299_v0  ;;  %v55_v3 = vld [vmem:[#allocation5 + $0x68] sm:$0xff]  ;;  %v54_v4 = vld [vmem:[#allocation5 + $0x60] sm:$0xff]  ;;  %v53_v5 = vld [vmem:[#allocation5 + $0x58] sm:$0xff]  ;;  %vm135_vm1 = vcmask 1043456   ;;  %s301_s24 = smov [#allocation7]  }
  0x1c   :  { %184 = vmatpush3.msra.mxu0 %v57_v1  ;;  %v52_v6 = vld [vmem:[#allocation5 + $0x50] sm:$0xff]  ;;  %v51_v7 = vld [vmem:[#allocation5 + $0x48] sm:$0xff]  ;;  %v50_v8 = vld [vmem:[#allocation5 + $0x40] sm:$0xff]  ;;  %s155_s25 = sshll.u32 %s301_s24, 4  ;;  %s156_s25 = int_to_ptr.vmem [resolvable:$true] %s155_s25 }
  0x1d   :  { %185 = vmatprep.subr.mxu0 %v299_v0  ;;  %v49_v9 = vld [vmem:[#allocation5 + $0x38] sm:$0xff]  ;;  %v48_v10 = vld [vmem:[#allocation5 + $0x30] sm:$0xff]  ;;  %v47_v11 = vld [vmem:[#allocation5 + $0x28] sm:$0xff]  ;;  %p274_p11 = scmp.lt.s32.totalorder %s156_s25, %s156_s25 }
  0x1e   :  { %186 = vmatpush3.msra.mxu0 %v56_v2  ;;  %v46_v12 = vld [vmem:[#allocation5 + $0x20] sm:$0xff]  ;;  %v45_v13 = vld [vmem:[#allocation5 + $0x18] sm:$0xff]  ;;  %v44_v14 = vld [vmem:[#allocation5 + $0x10] sm:$0xff] }
  0x1f   :  { %187 = vmatprep.subr.mxu0 %v299_v0  ;;  %v43_v15 = vld [vmem:[#allocation5 + $0x8] sm:$0xff]  ;;  %v42_v16 = vld [vmem:[#allocation5] sm:$0xff]  ;;  %v41_v17 = vld [vmem:[#allocation2] sm:$0xf] }
  0x20   :  { %188 = vmatpush3.msra.mxu0 %v55_v3  ;;  %v165_v18 = vld [vmem:[%s336_s2] ss:$0 sm:$0xff]  ;;  %s269_s2 = scalar_lea.vmem %s156_s25, 64 }
  0x21   :  { %189 = vmatprep.subr.mxu0 %v299_v0  ;;  %p270_p10 = scmp.ne.s32.totalorder %s156_s25, %s269_s2  ;;  %p275_p12 = scmp.lt.s32.totalorder %s269_s2, %s269_s2 }
  0x22   :  { %190 = vmatpush3.msra.mxu0 %v54_v4 }
  0x23   :  { %191 = vmatprep.subr.mxu0 %v299_v0  ;;  %p276_p13 = por %p275_p12, %p274_p11 }
  0x24   :  { %192 = vmatpush3.msra.mxu0 %v53_v5 }
  0x25   :  { %193 = vmatprep.subr.mxu0 %v299_v0  ;;  %p277_p0 = pnand %p276_p13, %p270_p10 }
  0x26   :  { %194 = vmatpush3.msra.mxu0 %v52_v6 }
  0x27   :  { %195 = vmatprep.subr.mxu0 %v299_v0 }
  0x28   :  { %196 = vmatpush3.msra.mxu0 %v51_v7 }
  0x29   :  { %197 = vmatprep.subr.mxu0 %v299_v0 }
  0x2a   :  { %198 = vmatpush3.msra.mxu0 %v50_v8 }
  0x2b   :  { %199 = vmatprep.subr.mxu0 %v299_v0 }
  0x2c   :  { %200 = vmatpush3.msra.mxu0 %v49_v9 }
  0x2d   :  { %201 = vmatprep.subr.mxu0 %v299_v0 }
  0x2e   :  { %202 = vmatpush3.msra.mxu0 %v48_v10 }
  0x2f   :  { %203 = vmatprep.subr.mxu0 %v299_v0 }
  0x30   :  { %204 = vmatpush3.msra.mxu0 %v47_v11 }
  0x31   :  { %205 = vmatprep.subr.mxu0 %v299_v0 }
  0x32   :  { %206 = vmatpush3.msra.mxu0 %v46_v12 }
  0x33   :  { %207 = vmatprep.subr.mxu0 %v299_v0 }
  0x34   :  { %208 = vmatpush3.msra.mxu0 %v45_v13 }
  0x35   :  { %209 = vmatprep.subr.mxu0 %v299_v0 }
  0x36   :  { %210 = vmatpush3.msra.mxu0 %v44_v14 }
  0x37   :  { %211 = vmatprep.subr.mxu0 %v299_v0 }
  0x38   :  { %212 = vmatpush3.msra.mxu0 %v43_v15 }
  0x39   :  { %213 = vmatprep.subr.mxu0 %v299_v0 }
  0x3a   :  { %214 = vmatpush3.msra.mxu0 %v42_v16 }
  0x3b   :  { %216 = vmatmul.mubr.f32.vlgmr.msra.gmra.mxu0 %v41_v17 }
  0xfb   :  { %v131_v19 = vpop.f32.mrf.mxu0 }
  0xfc   :  { %v132_v20 = vadd.f32 %v165_v18, %v131_v19 }
  0xfd   :  { %v217_v21 = vpop.f32.mrf.mxu0 }
  0xfe   :  { %v136_v22 = vsel %vm135_vm1, %v132_v20, -inf }
  0xff   :  { %137 = vmax.xlane.f32.xlu0 %v136_v22 }
 0x188   :  { %v138_v23 = vpop.xlane.xlu0 %137 }
 0x189   :  { %v139_v24 = vsub.f32 %v132_v20, %v138_v23 }
 0x18b   :  { %v140_v25 = vmul.f32 1.442695, %v139_v24 }
 0x18d   :  { %225 = vpow2.f32 %v140_v25 }
 0x19a   :  { %v226_v26 = vpop.eup %225 }
 0x19b   :  { %v142_v27 = vsel %vm135_vm1, %v226_v26, 0.0 }
 0x19c   :  { %143 = vadd.xlane.f32.xlu0 %v142_v27 }
 0x225   :  { %v144_v28 = vpop.xlane.xlu0 %143 }
 0x226   :  { %227 = vlog2.f32 %v144_v28 }
 0x233   :  { %v228_v29 = vpop.eup %227 }
 0x234   :  { %v146_v30 = vmul.f32 0.6931472, %v228_v29 }
 0x236   :  { %v147_v31 = vsub.f32 %v139_v24, %v146_v30 }
 0x238   :  { %148 = vst [vmem:[#allocation7] sm:$0xf] %v147_v31 }
 0x239   :  { %280 = shalt.err (!%p277_p0)
}
 0x23a   :  { %158 = dma.vmem_to_hbm [thread:$0]  %s156_s25, 64, %s337_s3, [#allocation4]  }
 0x23b   :  { %293 = dma.done.wait [#allocation4], 64  }
 0x23c   :  { %294 = vsyncadd [#allocation4], 4294967232 }
 0x23d   :  { %162 = vsyncpa [#allocation3], 1 }
 0x23e   :  { %163 = vsyncpa [#allocation6], 1 }
 0x23f   :  { %164 = vsyncpa [#allocation4], 1 }

</bundles_post_ra>
